<compile_context>
chip_gen: v6e
topology: v6e:2x2x1
jax: 0.10.0
libtpu: 0.0.40
codegen_flags: <defaults>
</compile_context>

<pallas_src>
import functools

import jax
import jax.numpy as jnp
from jax.experimental import pallas as pl
from jax.experimental.pallas import tpu as pltpu

LANES = 128
MAX_BLOCK_ROWS = 1024  # 1024x128 f32 = 512 KiB / stream / buffer; fits v5e's
                       # 16 MiB scoped-VMEM default with double buffering.


def _focal_loss_partial_kernel(p_ref, t_ref, out_ref, *, alpha, gamma):
    p = p_ref[...].astype(jnp.float32)
    t = t_ref[...].astype(jnp.float32)

    # F.binary_cross_entropy clamps the log terms at -100 (PyTorch semantics).
    log_p = jnp.maximum(jnp.log(p), -100.0)
    log_1mp = jnp.maximum(jnp.log(1.0 - p), -100.0)
    ce = -(t * log_p + (1.0 - t) * log_1mp)

    p_t = p * t + (1.0 - p) * (1.0 - t)
    one_m_pt = 1.0 - p_t

    # Focal modulation (1 - p_t) ** gamma. gamma is a compile-time Python
    # float; for small integer gamma (the default gamma=2) use repeated VPU
    # multiplies instead of an EUP pow (= exp + log per element).
    g = float(gamma)
    if g == 0.0:
        mod = jnp.ones_like(one_m_pt)
    elif g.is_integer() and 1.0 <= g <= 8.0:
        mod = one_m_pt
        for _ in range(int(g) - 1):
            mod = mod * one_m_pt
    else:
        mod = one_m_pt ** g  # non-integer gamma: EUP pow fallback

    loss = ce * mod

    if alpha >= 0:
        alpha_t = alpha * t + (1.0 - alpha) * (1.0 - t)
        loss = alpha_t * loss

    # Reduce the (block_rows, 128) tile to a single (8, 128) vreg with pure
    # elementwise (VPU) adds; the cross-lane reduction happens once, outside.
    rows, lanes = loss.shape
    partial = loss.reshape(rows // 8, 8, lanes).sum(axis=0)
    out_ref[0] = partial


def sigmoid_focal_loss(inputs, targets, alpha=0.25, gamma=2.0, reduction="mean"):
    """Pallas implementation of SigmoidFocalLoss.forward.

    inputs/targets: float arrays of identical (arbitrary) shape, probabilities
    in [0, 1]. Returns a scalar for reduction in {'mean', 'sum'}.
    """
    assert inputs.shape == targets.shape
    total = int(inputs.size)

    if reduction not in ("mean", "sum"):
        # TODO(synk): 'none' reduction (returning the elementwise loss map) is
        # not implemented in this wrapper.
        raise NotImplementedError("this kernel wrapper implements 'mean'/'sum'")

    flat_p = inputs.reshape(-1)
    flat_t = targets.reshape(-1)

    rows_needed = pl.cdiv(total, LANES)
    rows_aligned = ((rows_needed + 7) // 8) * 8           # sublane multiple of 8
    block_rows = min(MAX_BLOCK_ROWS, rows_aligned)
    num_blocks = pl.cdiv(rows_aligned, block_rows)
    padded_rows = num_blocks * block_rows
    padded_total = padded_rows * LANES

    pad = padded_total - total
    if pad:
        # Padding with p = 1, t = 1 contributes exactly zero loss
        # (ce = 0 and (1 - p_t) = 0), so no masking is needed.
        flat_p = jnp.concatenate([flat_p, jnp.ones((pad,), flat_p.dtype)])
        flat_t = jnp.concatenate([flat_t, jnp.ones((pad,), flat_t.dtype)])

    # Native dtype in HBM; the cast to f32 happens inside the kernel.
    p2d = flat_p.reshape(padded_rows, LANES)
    t2d = flat_t.reshape(padded_rows, LANES)

    kernel = functools.partial(
        _focal_loss_partial_kernel, alpha=float(alpha), gamma=float(gamma)
    )

    partials = pl.pallas_call(
        kernel,
        out_shape=jax.ShapeDtypeStruct((num_blocks, 8, LANES), jnp.float32),
        grid_spec=pltpu.PrefetchScalarGridSpec(
            num_scalar_prefetch=0,
            grid=(num_blocks,),
            in_specs=[
                pl.BlockSpec((block_rows, LANES), lambda i: (i, 0)),
                pl.BlockSpec((block_rows, LANES), lambda i: (i, 0)),
            ],
            out_specs=pl.BlockSpec((1, 8, LANES), lambda i: (i, 0, 0)),
        ),
        compiler_params=pltpu.CompilerParams(
            dimension_semantics=("parallel",)
        ),
    )(p2d, t2d)

    total_sum = jnp.sum(partials)  # tiny final tree-reduce over per-block partials
    if reduction == "mean":
        return total_sum / jnp.float32(total)
    return total_sum


def _reference(inputs, targets, alpha=0.25, gamma=2.0):
    p = inputs.astype(jnp.float32)
    t = targets.astype(jnp.float32)
    ce = -(t * jnp.maximum(jnp.log(p), -100.0)
           + (1 - t) * jnp.maximum(jnp.log(1 - p), -100.0))
    p_t = p * t + (1 - p) * (1 - t)
    loss = ce * (1 - p_t) ** gamma
    if alpha >= 0:
        alpha_t = alpha * t + (1 - alpha) * (1 - t)
        loss = alpha_t * loss
    return loss.mean()


if __name__ == "__main__":
    key = jax.random.PRNGKey(0)
    k1, k2 = jax.random.split(key)
    # NCHW probability map, matching the module's "arbitrary shape" contract.
    x_shape = (2, 4, 16, 16)
    inputs = jax.nn.sigmoid(jax.random.normal(k1, x_shape, dtype=jnp.float32))
    targets = (jax.random.uniform(k2, x_shape) > 0.5).astype(jnp.float32)

    loss = sigmoid_focal_loss(inputs, targets, alpha=0.25, gamma=2.0, reduction="mean")
    loss = jax.block_until_ready(loss)

    ref = _reference(inputs, targets)
    assert jnp.allclose(loss, ref, rtol=1e-5, atol=1e-6), (loss, ref)
    print("KERNEL_OK")
</pallas_src>

<mosaic_0001>
module attributes {stable_mosaic.version = 11 : i64} {
  func.func @_focal_loss_partial_kernel(%arg0: i32, %arg1: memref<16x128xf32, #tpu.memory_space<vmem>>, %arg2: memref<16x128xf32, #tpu.memory_space<vmem>>, %arg3: memref<1x8x128xf32, #tpu.memory_space<vmem>>) attributes {dimension_semantics = [#tpu.dimension_semantics<parallel>], iteration_bounds = array<i64: 1>, scalar_prefetch = 0 : i64, scratch_operands = 0 : i64, tpu.core_type = #tpu.core_type<tc>, window_params = [{transform_indices = @transform_0, window_bounds = array<i64: 16, 128>}, {transform_indices = @transform_1, window_bounds = array<i64: 16, 128>}, {transform_indices = @transform_2, window_bounds = array<i64: 1, 8, 128>}]} {
    %c0 = arith.constant 0 : index
    %c0_0 = arith.constant 0 : index
    %0 = vector.load %arg1[%c0, %c0_0] : memref<16x128xf32, #tpu.memory_space<vmem>>, vector<16x128xf32>
    %c0_1 = arith.constant 0 : index
    %c0_2 = arith.constant 0 : index
    %1 = vector.load %arg2[%c0_1, %c0_2] : memref<16x128xf32, #tpu.memory_space<vmem>>, vector<16x128xf32>
    %2 = math.log %0 : vector<16x128xf32>
    %cst = arith.constant -1.000000e+02 : f32
    %3 = vector.broadcast %cst : f32 to vector<16x128xf32>
    %4 = arith.maximumf %2, %3 : vector<16x128xf32>
    %cst_3 = arith.constant 1.000000e+00 : f32
    %5 = vector.broadcast %cst_3 : f32 to vector<16x128xf32>
    %6 = arith.subf %5, %0 : vector<16x128xf32>
    %7 = math.log %6 : vector<16x128xf32>
    %cst_4 = arith.constant -1.000000e+02 : f32
    %8 = vector.broadcast %cst_4 : f32 to vector<16x128xf32>
    %9 = arith.maximumf %7, %8 : vector<16x128xf32>
    %10 = arith.mulf %1, %4 : vector<16x128xf32>
    %cst_5 = arith.constant 1.000000e+00 : f32
    %11 = vector.broadcast %cst_5 : f32 to vector<16x128xf32>
    %12 = arith.subf %11, %1 : vector<16x128xf32>
    %13 = arith.mulf %12, %9 : vector<16x128xf32>
    %14 = arith.addf %10, %13 : vector<16x128xf32>
    %cst_6 = arith.constant 0.000000e+00 : f32
    %15 = vector.broadcast %cst_6 : f32 to vector<16x128xf32>
    %16 = arith.subf %15, %14 : vector<16x128xf32>
    %17 = arith.mulf %0, %1 : vector<16x128xf32>
    %cst_7 = arith.constant 1.000000e+00 : f32
    %18 = vector.broadcast %cst_7 : f32 to vector<16x128xf32>
    %19 = arith.subf %18, %0 : vector<16x128xf32>
    %cst_8 = arith.constant 1.000000e+00 : f32
    %20 = vector.broadcast %cst_8 : f32 to vector<16x128xf32>
    %21 = arith.subf %20, %1 : vector<16x128xf32>
    %22 = arith.mulf %19, %21 : vector<16x128xf32>
    %23 = arith.addf %17, %22 : vector<16x128xf32>
    %cst_9 = arith.constant 1.000000e+00 : f32
    %24 = vector.broadcast %cst_9 : f32 to vector<16x128xf32>
    %25 = arith.subf %24, %23 : vector<16x128xf32>
    %26 = arith.mulf %25, %25 : vector<16x128xf32>
    %27 = arith.mulf %16, %26 : vector<16x128xf32>
    %cst_10 = arith.constant 2.500000e-01 : f32
    %28 = vector.broadcast %cst_10 : f32 to vector<16x128xf32>
    %29 = arith.mulf %28, %1 : vector<16x128xf32>
    %cst_11 = arith.constant 1.000000e+00 : f32
    %30 = vector.broadcast %cst_11 : f32 to vector<16x128xf32>
    %31 = arith.subf %30, %1 : vector<16x128xf32>
    %cst_12 = arith.constant 7.500000e-01 : f32
    %32 = vector.broadcast %cst_12 : f32 to vector<16x128xf32>
    %33 = arith.mulf %32, %31 : vector<16x128xf32>
    %34 = arith.addf %29, %33 : vector<16x128xf32>
    %35 = arith.mulf %34, %27 : vector<16x128xf32>
    %36 = vector.shape_cast %35 : vector<16x128xf32> to vector<2x8x128xf32>
    %cst_13 = arith.constant dense<0.000000e+00> : vector<8x128xf32>
    %37 = vector.multi_reduction <add>, %36, %cst_13 [0] : vector<2x8x128xf32> to vector<8x128xf32>
    %c0_14 = arith.constant 0 : index
    %c0_15 = arith.constant 0 : index
    %c0_16 = arith.constant 0 : index
    %38 = vector.load %arg3[%c0_14, %c0_15, %c0_16] : memref<1x8x128xf32, #tpu.memory_space<vmem>>, vector<1x8x128xf32>
    %39 = vector.shape_cast %38 : vector<1x8x128xf32> to vector<8x128xf32>
    %40 = vector.shape_cast %37 : vector<8x128xf32> to vector<1x8x128xf32>
    tpu.vector_store %arg3[%c0_14, %c0_15, %c0_16], %40 {strides = array<i32>} : memref<1x8x128xf32, #tpu.memory_space<vmem>>, vector<1x8x128xf32>,
    return
  }
  func.func @transform_0(%arg0: i32) -> (i32, i32) {
    %c0_i32 = arith.constant 0 : i32
    %c0_i32_0 = arith.constant 0 : i32
    return %arg0, %c0_i32 : i32, i32
  }
  func.func @transform_1(%arg0: i32) -> (i32, i32) {
    %c0_i32 = arith.constant 0 : i32
    %c0_i32_0 = arith.constant 0 : i32
    return %arg0, %c0_i32 : i32, i32
  }
  func.func @transform_2(%arg0: i32) -> (i32, i32, i32) {
    %c0_i32 = arith.constant 0 : i32
    %c0_i32_0 = arith.constant 0 : i32
    %c0_i32_1 = arith.constant 0 : i32
    return %arg0, %c0_i32, %c0_i32_0 : i32, i32, i32
  }
}

</mosaic_0001>

<bundles_post_ra>
// kernel: tpu_custom_call.1
= control target key start
LH: loop header
LB: loop body
LE: loop exit
PB: predicated region body
PF: predicated region fallthrough
CT: control target
= control target key end

     0   :  { %7 = vsyncpa [#allocation3], 0  ;;  %s214_s0 = inlined_call_operand.hbm [shape: f32[16,128], index: 0, kind: input, shape index: {}]   ;;  %s215_s1 = inlined_call_operand.hbm [shape: f32[16,128], index: 1, kind: input, shape index: {}]   ;;  %s216_s2 = inlined_call_operand.hbm [shape: f32[1,8,128], index: 2, kind: output, shape index: {}]  }
   0x1   :  { %8 = vsyncpa [#allocation6], 0 }
   0x2   :  { %9 = vsyncpa [#allocation4], 0  ;;  %s185_s9 = smov [#allocation2]  }
   0x3   :  { %s15_s10 = sshll.u32 %s185_s9, 4  ;;  %s16_s10 = int_to_ptr.vmem [resolvable:$true] %s15_s10 }
   0x4   :  { %s127_s11 = scalar_lea.vmem %s16_s10, 256  ;;  %p132_p1 = scmp.lt.s32.totalorder %s16_s10, %s16_s10 }
   0x5   :  { %p128_p0 = scmp.ne.s32.totalorder %s16_s10, %s127_s11  ;;  %p133_p2 = scmp.lt.s32.totalorder %s127_s11, %s127_s11 }
   0x7   :  { %p134_p3 = por %p133_p2, %p132_p1 }
   0x9   :  { %p135_p4 = pnand %p134_p3, %p128_p0 }
   0xb   :  { %138 = shalt.err (!%p135_p4)
}
   0xc   :  { %s186_s12 = smov 128   ;;  %s187_s13 = smov 8  }
   0xd   :  { %21 = dma.hbm_to_vmem [thread:$0]  %s214_s0, 256, %s16_s10, [#allocation3], %s186_s12, %s186_s12, %s187_s13  }
   0xe   :  { %s188_s16 = smov [#allocation5]  }
   0xf   :  { %s27_s17 = sshll.u32 %s188_s16, 4  ;;  %s28_s17 = int_to_ptr.vmem [resolvable:$true] %s27_s17 }
  0x10   :  { %s147_s18 = scalar_lea.vmem %s28_s17, 256  ;;  %p152_p6 = scmp.lt.s32.totalorder %s28_s17, %s28_s17 }
  0x11   :  { %p148_p5 = scmp.ne.s32.totalorder %s28_s17, %s147_s18  ;;  %p153_p7 = scmp.lt.s32.totalorder %s147_s18, %s147_s18 }
  0x13   :  { %p154_p8 = por %p153_p7, %p152_p6 }
  0x15   :  { %p155_p9 = pnand %p154_p8, %p148_p5 }
  0x17   :  { %158 = shalt.err (!%p155_p9)
}
  0x18   :  { %33 = dma.hbm_to_vmem [thread:$0]  %s215_s1, 256, %s28_s17, [#allocation6], %s186_s12, %s186_s12, %s187_s13  }
  0x19   :  { %179 = dma.done.wait [#allocation3], 256  }
  0x1a   :  { %180 = vsyncadd [#allocation3], 4294967040 }
  0x1b   :  { %181 = dma.done.wait [#allocation6], 256  }
  0x1c   :  { %182 = vsyncadd [#allocation6], 4294967040  ;;  %v40_v0 = vld [vmem:[#allocation2] sm:$0xff]  ;;  %v41_v1 = vld [vmem:[#allocation2 + $0x8] sm:$0xff]  ;;  %s189_s0 = smov [#allocation7]  }
  0x1d   :  { %111 = vlog2.f32 %v40_v0  ;;  %v50_v2 = vsub.f32 1.0, %v40_v0  ;;  %v51_v3 = vsub.f32 1.0, %v41_v1  ;;  %v42_v4 = vld [vmem:[#allocation5] sm:$0xff]  ;;  %v43_v5 = vld [vmem:[#allocation5 + $0x8] sm:$0xff]  ;;  %s96_s1 = sshll.u32 %s189_s0, 4  ;;  %s97_s1 = int_to_ptr.vmem [resolvable:$true] %s96_s1 }
  0x1e   :  { %113 = vlog2.f32 %v41_v1  ;;  %v60_v6 = vsub.f32 1.0, %v42_v4  ;;  %v61_v7 = vsub.f32 1.0, %v43_v5  ;;  %v68_v8 = vmul.f32 %v42_v4, %v40_v0  ;;  %s159_s21 = scalar_lea.vmem %s97_s1, 128  ;;  %p164_p11 = scmp.lt.s32.totalorder %s97_s1, %s97_s1 }
  0x1f   :  { %115 = vlog2.f32 %v50_v2  ;;  %v69_v10 = vmul.f32 %v43_v5, %v41_v1  ;;  %v80_v31 = vmul.f32 0.25, %v42_v4  ;;  %v81_v34 = vmul.f32 0.25, %v43_v5  ;;  %p160_p10 = scmp.ne.s32.totalorder %s97_s1, %s159_s21  ;;  %p165_p12 = scmp.lt.s32.totalorder %s159_s21, %s159_s21 }
  0x20   :  { %117 = vlog2.f32 %v51_v3  ;;  %v70_v9 = vmul.f32 %v60_v6, %v50_v2  ;;  %v71_v11 = vmul.f32 %v61_v7, %v51_v3  ;;  %v82_v32 = vmul.f32 0.75, %v60_v6 }
  0x21   :  { %v83_v35 = vmul.f32 0.75, %v61_v7  ;;  %p166_p13 = por %p165_p12, %p164_p11 }
  0x22   :  { %v72_v15 = vadd.f32 %v70_v9, %v68_v8  ;;  %v73_v18 = vadd.f32 %v71_v11, %v69_v10  ;;  %v84_v41 = vadd.f32 %v82_v32, %v80_v31 }
  0x23   :  { %v85_v43 = vadd.f32 %v83_v35, %v81_v34  ;;  %p167_p0 = pnand %p166_p13, %p160_p10 }
  0x24   :  { %v74_v26 = vsub.f32 1.0, %v72_v15  ;;  %v75_v29 = vsub.f32 1.0, %v73_v18 }
  0x26   :  { %v76_v37 = vmul.f32 %v74_v26, %v74_v26  ;;  %v77_v39 = vmul.f32 %v75_v29, %v75_v29 }
  0x2a   :  { %v112_v12 = vpop.eup %111 }
  0x2b   :  { %v114_v13 = vpop.eup %113  ;;  %v45_v14 = vmul.f32 0.6931472, %v112_v12 }
  0x2c   :  { %v116_v16 = vpop.eup %115  ;;  %v47_v17 = vmul.f32 0.6931472, %v114_v13 }
  0x2d   :  { %v118_v19 = vpop.eup %117  ;;  %v48_v20 = vmax.f32 %v45_v14, -100.0  ;;  %v53_v21 = vmul.f32 0.6931472, %v116_v16 }
  0x2e   :  { %v49_v22 = vmax.f32 %v47_v17, -100.0  ;;  %v55_v23 = vmul.f32 0.6931472, %v118_v19 }
  0x2f   :  { %v56_v24 = vmax.f32 %v53_v21, -100.0  ;;  %v58_v25 = vmul.f32 %v48_v20, %v42_v4 }
  0x30   :  { %v57_v27 = vmax.f32 %v55_v23, -100.0  ;;  %v59_v28 = vmul.f32 %v49_v22, %v43_v5 }
  0x31   :  { %v62_v30 = vmul.f32 %v60_v6, %v56_v24 }
  0x32   :  { %v63_v33 = vmul.f32 %v61_v7, %v57_v27 }
  0x33   :  { %v64_v36 = vadd.f32 %v62_v30, %v58_v25 }
  0x34   :  { %v65_v38 = vadd.f32 %v63_v33, %v59_v28 }
  0x35   :  { %v66_v40 = vsub.f32 0.0, %v64_v36 }
  0x36   :  { %v67_v42 = vsub.f32 0.0, %v65_v38 }
  0x37   :  { %v78_v44 = vmul.f32 %v76_v37, %v66_v40 }
  0x38   :  { %v79_v45 = vmul.f32 %v77_v39, %v67_v42 }
  0x39   :  { %v86_v46 = vmul.f32 %v84_v41, %v78_v44 }
  0x3a   :  { %v87_v47 = vmul.f32 %v85_v43, %v79_v45 }
  0x3c   :  { %v88_v48 = vadd.f32 %v87_v47, %v86_v46 }
  0x3e   :  { %89 = vst [vmem:[#allocation7] sm:$0xff] %v88_v48 }
  0x3f   :  { %170 = shalt.err (!%p167_p0)
}
  0x40   :  { %99 = dma.vmem_to_hbm [thread:$0]  %s97_s1, 128, %s216_s2, [#allocation4]  }
  0x41   :  { %183 = dma.done.wait [#allocation4], 128  }
  0x42   :  { %184 = vsyncadd [#allocation4], 4294967168 }
  0x43   :  { %103 = vsyncpa [#allocation3], 1 }
  0x44   :  { %104 = vsyncpa [#allocation6], 1 }
  0x45   :  { %105 = vsyncpa [#allocation4], 1 }

</bundles_post_ra>
